<compile_context>
chip_gen: v7x
topology: tpu7x:2x2x1
jax: 0.10.0
libtpu: 0.0.40
codegen_flags: <defaults>
</compile_context>

<pallas_src>
import functools

import jax
import jax.numpy as jnp
from jax.experimental import pallas as pl
from jax.experimental.pallas import tpu as pltpu

IN_DIM = 13
HIDDEN = 128


def _round_up(n, m):
    return (n + m - 1) // m * m


def _encoder_kernel(x_ref, w1_ref, b1_ref, w2_ref, b2_ref, out_ref, *, fold, e_dim):
    # x_ref:  (TBf, fold*13)   fold batch rows packed along lanes
    # w1_ref: (13, 128)        b1_ref: (1, 128)
    # w2_ref: (128, E)         b2_ref: (1, E)
    # out_ref:(TBf, fold*E)    lane-dense output tile (fold*E == 128 when fold>1)
    w1 = w1_ref[...]
    b1 = b1_ref[...]
    w2 = w2_ref[...]
    b2 = b2_ref[...]
    for f in range(fold):  # static unroll; fold is small (<= 8)
        xf = x_ref[:, f * IN_DIM:(f + 1) * IN_DIM]                       # (TBf, 13)
        h = jnp.dot(xf, w1, preferred_element_type=jnp.float32) + b1     # (TBf, 128)
        h = jnp.maximum(h, 0.0)                                          # ReLU, f32
        h = h.astype(w2.dtype)
        yf = jnp.dot(h, w2, preferred_element_type=jnp.float32) + b2     # (TBf, E)
        out_ref[:, f * e_dim:(f + 1) * e_dim] = yf.astype(out_ref.dtype)


def encoder_forward(x, params, *, batch_tile=1024, compute_dtype=jnp.float32):
    """Encoder forward pass with a tiled, pipelined Pallas kernel.

    x: (B, 13); params: w1 (13,128), b1 (128,), w2 (128,E), b2 (E,).
    Returns the squeezed output, matching torch's `.squeeze()`.
    """
    w1 = params["w1"].astype(compute_dtype)
    b1 = params["b1"].reshape(1, HIDDEN).astype(jnp.float32)
    w2 = params["w2"].astype(compute_dtype)
    b2 = params["b2"].reshape(1, -1).astype(jnp.float32)
    x = x.astype(compute_dtype)

    B = x.shape[0]
    E = w2.shape[1]

    # Fold factor so the output tile is (up to) 128 lanes wide -> unmasked,
    # lane-dense stores and dense output DMA.  Capped to keep the static unroll
    # small; fold=1 is the generic fallback for E that doesn't divide 128.
    if E <= 128 and 128 % E == 0:
        fold = max(1, min(128 // E, 8))
    else:
        fold = 1

    # Batch tile: multiple of 8*fold so the folded tile keeps 8-row sublane
    # alignment; shrink for tiny batches so we don't over-pad.
    tb = max(8 * fold, min(batch_tile, _round_up(B, 8 * fold)))
    tb = _round_up(tb, 8 * fold)
    tbf = tb // fold

    # Pad the batch to a tile multiple (padded rows are computed and discarded).
    bp = _round_up(B, tb)
    if bp != B:
        x = jnp.pad(x, ((0, bp - B), (0, 0)))

    # Row-major fold: a free reshape on both sides of the kernel.
    x_folded = x.reshape(bp // fold, fold * IN_DIM)
    grid = (pl.cdiv(bp, tb),)

    kernel = functools.partial(_encoder_kernel, fold=fold, e_dim=E)

    itemsize = jnp.dtype(compute_dtype).itemsize
    cost = pl.CostEstimate(
        flops=2 * bp * (IN_DIM * HIDDEN + HIDDEN * E),
        transcendentals=0,
        bytes_accessed=(bp * IN_DIM * itemsize                 # x stream
                        + (IN_DIM * HIDDEN + HIDDEN * E) * itemsize  # weights
                        + (HIDDEN + E) * 4                     # biases
                        + bp * E * 4),                         # output stream
    )

    out = pl.pallas_call(
        kernel,
        out_shape=jax.ShapeDtypeStruct((bp // fold, fold * E), jnp.float32),
        grid=grid,
        in_specs=[
            pl.BlockSpec((tbf, fold * IN_DIM), lambda i: (i, 0)),  # x: tiled over batch
            pl.BlockSpec((IN_DIM, HIDDEN), lambda i: (0, 0)),      # w1: VMEM-resident
            pl.BlockSpec((1, HIDDEN), lambda i: (0, 0)),           # b1: VMEM-resident
            pl.BlockSpec((HIDDEN, E), lambda i: (0, 0)),           # w2: VMEM-resident
            pl.BlockSpec((1, E), lambda i: (0, 0)),                # b2: VMEM-resident
        ],
        out_specs=pl.BlockSpec((tbf, fold * E), lambda i: (i, 0)),
        compiler_params=pltpu.CompilerParams(
            dimension_semantics=("parallel",),  # shard batch tiles across TCs on v7x
        ),
        cost_estimate=cost,
    )(x_folded, w1, b1, w2, b2)

    y = out.reshape(bp, E)[:B]   # undo the fold (free reshape) and drop padding
    return jnp.squeeze(y)        # torch: self.encoder_layer(x).squeeze()


def init_params(key, encode_dim):
    """Deterministic init mimicking nn.Linear default (uniform +/- 1/sqrt(fan_in))."""
    k1, k2, k3, k4 = jax.random.split(key, 4)
    bound1 = 1.0 / jnp.sqrt(jnp.float32(IN_DIM))
    bound2 = 1.0 / jnp.sqrt(jnp.float32(HIDDEN))
    return {
        "w1": jax.random.uniform(k1, (IN_DIM, HIDDEN), jnp.float32, -bound1, bound1),
        "b1": jax.random.uniform(k2, (HIDDEN,), jnp.float32, -bound1, bound1),
        "w2": jax.random.uniform(k3, (HIDDEN, encode_dim), jnp.float32, -bound2, bound2),
        "b2": jax.random.uniform(k4, (encode_dim,), jnp.float32, -bound2, bound2),
    }


def encoder_ref(x, params):
    """Pure-JAX reference of the same forward pass."""
    h = jnp.maximum(x @ params["w1"] + params["b1"], 0.0)
    y = h @ params["w2"] + params["b2"]
    return jnp.squeeze(y)


if __name__ == "__main__":
    key = jax.random.PRNGKey(0)
    kx, kp, kx2, kx3 = jax.random.split(key, 4)

    # Small demo shapes consistent with the module: features=13, encode_dim=32.
    batch, encode_dim = 8, 32
    x = jax.random.normal(kx, (batch, IN_DIM), jnp.float32)
    params = init_params(kp, encode_dim)

    out = jax.block_until_ready(encoder_forward(x, params))
    ref = encoder_ref(x, params)
    assert out.shape == ref.shape == (batch, encode_dim)
    assert jnp.allclose(out, ref, atol=2e-5, rtol=2e-5)

    # Multi-tile grid + batch-padding path (B not a multiple of the tile).
    x2 = jax.random.normal(kx2, (300, IN_DIM), jnp.float32)
    out2 = jax.block_until_ready(encoder_forward(x2, params, batch_tile=64))
    ref2 = encoder_ref(x2, params)
    assert out2.shape == ref2.shape
    assert jnp.allclose(out2, ref2, atol=2e-5, rtol=2e-5)

    # encode_dim that does not divide 128 -> fold=1 fallback path.
    params3 = init_params(kp, 7)
    x3 = jax.random.normal(kx3, (50, IN_DIM), jnp.float32)
    out3 = jax.block_until_ready(encoder_forward(x3, params3, batch_tile=16))
    ref3 = encoder_ref(x3, params3)
    assert out3.shape == ref3.shape
    assert jnp.allclose(out3, ref3, atol=2e-5, rtol=2e-5)

    print("KERNEL_OK")
</pallas_src>

<mosaic_0001>
module attributes {stable_mosaic.version = 11 : i64} {
  func.func @_encoder_kernel(%arg0: i32, %arg1: memref<8x52xf32, #tpu.memory_space<vmem>>, %arg2: memref<13x128xf32, #tpu.memory_space<vmem>>, %arg3: memref<1x128xf32, #tpu.memory_space<vmem>>, %arg4: memref<128x32xf32, #tpu.memory_space<vmem>>, %arg5: memref<1x32xf32, #tpu.memory_space<vmem>>, %arg6: memref<8x128xf32, #tpu.memory_space<vmem>>) attributes {dimension_semantics = [#tpu.dimension_semantics<parallel>], iteration_bounds = array<i64: 1>, scalar_prefetch = 0 : i64, scratch_operands = 0 : i64, tpu.core_type = #tpu.core_type<tc>, window_params = [{transform_indices = @transform_0, window_bounds = array<i64: 8, 52>}, {pipeline_mode = #tpu.pipeline_mode<synchronous>, transform_indices = @transform_1, window_bounds = array<i64: 13, 128>}, {pipeline_mode = #tpu.pipeline_mode<synchronous>, transform_indices = @transform_2, window_bounds = array<i64: 1, 128>}, {pipeline_mode = #tpu.pipeline_mode<synchronous>, transform_indices = @transform_3, window_bounds = array<i64: 128, 32>}, {pipeline_mode = #tpu.pipeline_mode<synchronous>, transform_indices = @transform_4, window_bounds = array<i64: 1, 32>}, {transform_indices = @transform_5, window_bounds = array<i64: 8, 128>}]} {
    %c0 = arith.constant 0 : index
    %c0_0 = arith.constant 0 : index
    %0 = vector.load %arg2[%c0, %c0_0] : memref<13x128xf32, #tpu.memory_space<vmem>>, vector<13x128xf32>
    %c0_1 = arith.constant 0 : index
    %c0_2 = arith.constant 0 : index
    %1 = vector.load %arg3[%c0_1, %c0_2] : memref<1x128xf32, #tpu.memory_space<vmem>>, vector<1x128xf32>
    %c0_3 = arith.constant 0 : index
    %c0_4 = arith.constant 0 : index
    %2 = vector.load %arg4[%c0_3, %c0_4] : memref<128x32xf32, #tpu.memory_space<vmem>>, vector<128x32xf32>
    %c0_5 = arith.constant 0 : index
    %c0_6 = arith.constant 0 : index
    %3 = vector.load %arg5[%c0_5, %c0_6] : memref<1x32xf32, #tpu.memory_space<vmem>>, vector<1x32xf32>
    %c0_7 = arith.constant 0 : index
    %c0_8 = arith.constant 0 : index
    %4 = vector.load %arg1[%c0_7, %c0_8] : memref<8x52xf32, #tpu.memory_space<vmem>>, vector<8x13xf32>
    %cst = arith.constant dense<0.000000e+00> : vector<8x128xf32>
    %5 = tpu.matmul %4, %0, %cst {dimension_numbers = #tpu.dot_dimension_numbers<[1], [0], [0], [1], [0, 0, 1, 1], [], []>} : vector<8x13xf32>, vector<13x128xf32>, vector<8x128xf32> -> vector<8x128xf32>
    %6 = vector.broadcast %1 : vector<1x128xf32> to vector<8x128xf32>
    %7 = arith.addf %5, %6 : vector<8x128xf32>
    %cst_9 = arith.constant 0.000000e+00 : f32
    %8 = vector.broadcast %cst_9 : f32 to vector<8x128xf32>
    %9 = arith.maximumf %7, %8 : vector<8x128xf32>
    %cst_10 = arith.constant dense<0.000000e+00> : vector<8x32xf32>
    %10 = tpu.matmul %9, %2, %cst_10 {dimension_numbers = #tpu.dot_dimension_numbers<[1], [0], [0], [1], [0, 0, 1, 1], [], []>} : vector<8x128xf32>, vector<128x32xf32>, vector<8x32xf32> -> vector<8x32xf32>
    %11 = vector.broadcast %3 : vector<1x32xf32> to vector<8x32xf32>
    %12 = arith.addf %10, %11 : vector<8x32xf32>
    %c0_11 = arith.constant 0 : index
    %c0_12 = arith.constant 0 : index
    %13 = vector.load %arg6[%c0_11, %c0_12] : memref<8x128xf32, #tpu.memory_space<vmem>>, vector<8x32xf32>
    tpu.vector_store %arg6[%c0_11, %c0_12], %12 {strides = array<i32>} : memref<8x128xf32, #tpu.memory_space<vmem>>, vector<8x32xf32>,
    %c0_13 = arith.constant 0 : index
    %c13 = arith.constant 13 : index
    %14 = vector.load %arg1[%c0_13, %c13] : memref<8x52xf32, #tpu.memory_space<vmem>>, vector<8x13xf32>
    %cst_14 = arith.constant dense<0.000000e+00> : vector<8x128xf32>
    %15 = tpu.matmul %14, %0, %cst_14 {dimension_numbers = #tpu.dot_dimension_numbers<[1], [0], [0], [1], [0, 0, 1, 1], [], []>} : vector<8x13xf32>, vector<13x128xf32>, vector<8x128xf32> -> vector<8x128xf32>
    %16 = vector.broadcast %1 : vector<1x128xf32> to vector<8x128xf32>
    %17 = arith.addf %15, %16 : vector<8x128xf32>
    %cst_15 = arith.constant 0.000000e+00 : f32
    %18 = vector.broadcast %cst_15 : f32 to vector<8x128xf32>
    %19 = arith.maximumf %17, %18 : vector<8x128xf32>
    %cst_16 = arith.constant dense<0.000000e+00> : vector<8x32xf32>
    %20 = tpu.matmul %19, %2, %cst_16 {dimension_numbers = #tpu.dot_dimension_numbers<[1], [0], [0], [1], [0, 0, 1, 1], [], []>} : vector<8x128xf32>, vector<128x32xf32>, vector<8x32xf32> -> vector<8x32xf32>
    %21 = vector.broadcast %3 : vector<1x32xf32> to vector<8x32xf32>
    %22 = arith.addf %20, %21 : vector<8x32xf32>
    %c0_17 = arith.constant 0 : index
    %c32 = arith.constant 32 : index
    %23 = vector.load %arg6[%c0_17, %c32] : memref<8x128xf32, #tpu.memory_space<vmem>>, vector<8x32xf32>
    tpu.vector_store %arg6[%c0_17, %c32], %22 {strides = array<i32>} : memref<8x128xf32, #tpu.memory_space<vmem>>, vector<8x32xf32>,
    %c0_18 = arith.constant 0 : index
    %c26 = arith.constant 26 : index
    %24 = vector.load %arg1[%c0_18, %c26] : memref<8x52xf32, #tpu.memory_space<vmem>>, vector<8x13xf32>
    %cst_19 = arith.constant dense<0.000000e+00> : vector<8x128xf32>
    %25 = tpu.matmul %24, %0, %cst_19 {dimension_numbers = #tpu.dot_dimension_numbers<[1], [0], [0], [1], [0, 0, 1, 1], [], []>} : vector<8x13xf32>, vector<13x128xf32>, vector<8x128xf32> -> vector<8x128xf32>
    %26 = vector.broadcast %1 : vector<1x128xf32> to vector<8x128xf32>
    %27 = arith.addf %25, %26 : vector<8x128xf32>
    %cst_20 = arith.constant 0.000000e+00 : f32
    %28 = vector.broadcast %cst_20 : f32 to vector<8x128xf32>
    %29 = arith.maximumf %27, %28 : vector<8x128xf32>
    %cst_21 = arith.constant dense<0.000000e+00> : vector<8x32xf32>
    %30 = tpu.matmul %29, %2, %cst_21 {dimension_numbers = #tpu.dot_dimension_numbers<[1], [0], [0], [1], [0, 0, 1, 1], [], []>} : vector<8x128xf32>, vector<128x32xf32>, vector<8x32xf32> -> vector<8x32xf32>
    %31 = vector.broadcast %3 : vector<1x32xf32> to vector<8x32xf32>
    %32 = arith.addf %30, %31 : vector<8x32xf32>
    %c0_22 = arith.constant 0 : index
    %c64 = arith.constant 64 : index
    %33 = vector.load %arg6[%c0_22, %c64] : memref<8x128xf32, #tpu.memory_space<vmem>>, vector<8x32xf32>
    tpu.vector_store %arg6[%c0_22, %c64], %32 {strides = array<i32>} : memref<8x128xf32, #tpu.memory_space<vmem>>, vector<8x32xf32>,
    %c0_23 = arith.constant 0 : index
    %c39 = arith.constant 39 : index
    %34 = vector.load %arg1[%c0_23, %c39] : memref<8x52xf32, #tpu.memory_space<vmem>>, vector<8x13xf32>
    %cst_24 = arith.constant dense<0.000000e+00> : vector<8x128xf32>
    %35 = tpu.matmul %34, %0, %cst_24 {dimension_numbers = #tpu.dot_dimension_numbers<[1], [0], [0], [1], [0, 0, 1, 1], [], []>} : vector<8x13xf32>, vector<13x128xf32>, vector<8x128xf32> -> vector<8x128xf32>
    %36 = vector.broadcast %1 : vector<1x128xf32> to vector<8x128xf32>
    %37 = arith.addf %35, %36 : vector<8x128xf32>
    %cst_25 = arith.constant 0.000000e+00 : f32
    %38 = vector.broadcast %cst_25 : f32 to vector<8x128xf32>
    %39 = arith.maximumf %37, %38 : vector<8x128xf32>
    %cst_26 = arith.constant dense<0.000000e+00> : vector<8x32xf32>
    %40 = tpu.matmul %39, %2, %cst_26 {dimension_numbers = #tpu.dot_dimension_numbers<[1], [0], [0], [1], [0, 0, 1, 1], [], []>} : vector<8x128xf32>, vector<128x32xf32>, vector<8x32xf32> -> vector<8x32xf32>
    %41 = vector.broadcast %3 : vector<1x32xf32> to vector<8x32xf32>
    %42 = arith.addf %40, %41 : vector<8x32xf32>
    %c0_27 = arith.constant 0 : index
    %c96 = arith.constant 96 : index
    %43 = vector.load %arg6[%c0_27, %c96] : memref<8x128xf32, #tpu.memory_space<vmem>>, vector<8x32xf32>
    tpu.vector_store %arg6[%c0_27, %c96], %42 {strides = array<i32>} : memref<8x128xf32, #tpu.memory_space<vmem>>, vector<8x32xf32>,
    return
  }
  func.func @transform_0(%arg0: i32) -> (i32, i32) {
    %c0_i32 = arith.constant 0 : i32
    %c0_i32_0 = arith.constant 0 : i32
    return %arg0, %c0_i32 : i32, i32
  }
  func.func @transform_1(%arg0: i32) -> (i32, i32) {
    %c0_i32 = arith.constant 0 : i32
    %c0_i32_0 = arith.constant 0 : i32
    %c0_i32_1 = arith.constant 0 : i32
    return %c0_i32, %c0_i32_0 : i32, i32
  }
  func.func @transform_2(%arg0: i32) -> (i32, i32) {
    %c0_i32 = arith.constant 0 : i32
    %c0_i32_0 = arith.constant 0 : i32
    %c0_i32_1 = arith.constant 0 : i32
    return %c0_i32, %c0_i32_0 : i32, i32
  }
  func.func @transform_3(%arg0: i32) -> (i32, i32) {
    %c0_i32 = arith.constant 0 : i32
    %c0_i32_0 = arith.constant 0 : i32
    %c0_i32_1 = arith.constant 0 : i32
    return %c0_i32, %c0_i32_0 : i32, i32
  }
  func.func @transform_4(%arg0: i32) -> (i32, i32) {
    %c0_i32 = arith.constant 0 : i32
    %c0_i32_0 = arith.constant 0 : i32
    %c0_i32_1 = arith.constant 0 : i32
    return %c0_i32, %c0_i32_0 : i32, i32
  }
  func.func @transform_5(%arg0: i32) -> (i32, i32) {
    %c0_i32 = arith.constant 0 : i32
    %c0_i32_0 = arith.constant 0 : i32
    return %arg0, %c0_i32 : i32, i32
  }
}

</mosaic_0001>

<bundles_post_ra>
// kernel: tpu_custom_call.1
= control target key start
LH: loop header
LB: loop body
LE: loop exit
PB: predicated region body
PF: predicated region fallthrough
CT: control target
= control target key end

     0   :  { %s1083_s24 = smov 115   ;;  %v1084_v3 = vmov 0.0|0.0   ;;  %vm52_vm0 = vcmask 1044480   ;;  %vm1085_vm1 = vmmov 1   ;;  %vm1087_vm3 = vmmov 0   ;;  %s1089_s7 = smov 102   ;;  %s1327_s0 = inlined_call_operand.vmem [shape: f32[8,52], index: 0, kind: input, shape index: {}]   ;;  %s1328_s1 = inlined_call_operand.vmem [shape: f32[13,128], index: 1, kind: input, shape index: {}]   ;;  %s1329_s2 = inlined_call_operand.vmem [shape: f32[1,128], index: 2, kind: input, shape index: {}]   ;;  %s1330_s3 = inlined_call_operand.vmem [shape: f32[128,32], index: 3, kind: input, shape index: {}]   ;;  %s1331_s4 = inlined_call_operand.vmem [shape: f32[1,32], index: 4, kind: input, shape index: {}]   ;;  %s1332_s5 = inlined_call_operand.hbm [shape: f32[8,128], index: 5, kind: output, shape index: {}]  }
   0x1   :  { %v205_v0 = vld [vmem:[%s1327_s0] sm:$0xff]  ;;  %v22_v2 = vld [vmem:[%s1328_s1 + $0x8] sm:$0x1f]  ;;  %936 = vmatprep.subr.bf16.mxu1 %v1084_v3  ;;  %vm1139_vm2 = vmpackc.low %vm52_vm0, %vm1085_vm1  ;;  %964 = vmatprep.subr.bf16.mxu0 %v1084_v3  ;;  %s1086_s0 = smov 89   ;;  %v1088_v8 = vmov 0.0   ;;  %vm48_vm4 = vcmask 105472  }
   0x2   :  { %v21_v1 = vld [vmem:[%s1328_s1] sm:$0xff]  ;;  %207 = vrot.lane.b32.xlu0 %v205_v0, %s1083_s24  ;;  %513 = vrot.lane.b32.xlu1 %v205_v0, %s1086_s0  ;;  %v25_v7 = vld [vmem:[%s1330_s3 + $0x8] sm:$0xff] }
   0x3   :  { %v1134_v4 = vpack.c.bf16 %v22_v2, %v21_v1  ;;  %v24_v5 = vld [vmem:[%s1330_s3] sm:$0xff]  ;;  %772 = vmatprep.mubr.msk.f32.mxu1 %vm1087_vm3, %v1088_v8  ;;  %814 = vmatprep.mubr.msk.f32.mxu0 %vm1087_vm3, %v1088_v8  ;;  %v26_v10 = vld [vmem:[%s1330_s3 + $0x10] sm:$0xff]  ;;  %v27_v11 = vld [vmem:[%s1330_s3 + $0x18] sm:$0xff] }
   0x4   :  { %v1152_v9 = vpack.c.bf16 %v25_v7, %v24_v5 }
   0x5   :  { %939 = vmatpush3.bf16.msk.msra.mxu1 %vm1139_vm2, %v1134_v4  ;;  %967 = vmatpush3.bf16.msk.msra.mxu0 %vm1139_vm2, %v1134_v4 }
   0x6   :  { %360 = vrot.lane.b32.xlu0 %v205_v0, %s1089_s7  ;;  %940 = vmatprep.subr.bf16.mxu1 %v1084_v3 }
   0x7   :  { %968 = vmatprep.subr.bf16.mxu0 %v1084_v3 }
   0x8   :  { %773 = vmatmul.mubr.msk.f32.vlgmr.msra.gmra.mrb[0].mxu1 %vm48_vm4, %v205_v0 }
   0x9   :  { %10 = vsyncpa [#allocation3], 0  ;;  %942 = vmatpush3.bf16.msra.mxu1 %v1152_v9  ;;  %v1169_v12 = vpack.c.bf16 %v27_v11, %v26_v10  ;;  %807 = vmatprep.mubr.msk.f32.mxu1 %vm1087_vm3, %v1088_v8  ;;  %v28_v13 = vld [vmem:[%s1330_s3 + $0x20] sm:$0xff]  ;;  %v29_v14 = vld [vmem:[%s1330_s3 + $0x28] sm:$0xff]  ;;  %vm203_vm5 = vcmask 261120   ;;  %s1090_s7 = smov 32  }
   0xa   :  { %943 = vmatprep.subr.bf16.mxu1 %v1084_v3  ;;  %v1181_v15 = vpack.c.bf16 %v29_v14, %v28_v13  ;;  %v30_v16 = vld [vmem:[%s1330_s3 + $0x30] sm:$0xff]  ;;  %v31_v17 = vld [vmem:[%s1330_s3 + $0x38] sm:$0xff]  ;;  %v32_v19 = vld [vmem:[%s1330_s3 + $0x40] sm:$0xff]  ;;  %vm356_vm6 = vcmask 523520   ;;  %s1092_s8 = smov 96   ;;  %vm509_vm7 = vcmask 785920  }
   0xb   :  { %v1191_v18 = vpack.c.bf16 %v31_v17, %v30_v16  ;;  %v33_v20 = vld [vmem:[%s1330_s3 + $0x48] sm:$0xff]  ;;  %v34_v22 = vld [vmem:[%s1330_s3 + $0x50] sm:$0xff]  ;;  %v35_v23 = vld [vmem:[%s1330_s3 + $0x58] sm:$0xff]  ;;  %s1093_s9 = smov [#allocation2]   ;;  %vm662_vm8 = vcmask 1048320  }
   0xc   :  { %v1201_v21 = vpack.c.bf16 %v33_v20, %v32_v19  ;;  %v1211_v24 = vpack.c.bf16 %v35_v23, %v34_v22  ;;  %v36_v25 = vld [vmem:[%s1330_s3 + $0x60] sm:$0xff]  ;;  %v37_v26 = vld [vmem:[%s1330_s3 + $0x68] sm:$0xff]  ;;  %v38_v28 = vld [vmem:[%s1330_s3 + $0x70] sm:$0xff]  ;;  %s670_s10 = sshll.u32 %s1093_s9, 4  ;;  %s671_s10 = int_to_ptr.vmem [resolvable:$true] %s670_s10 }
   0xd   :  { %945 = vmatpush3.bf16.msra.mxu1 %v1169_v12  ;;  %v1221_v27 = vpack.c.bf16 %v37_v26, %v36_v25  ;;  %v39_v29 = vld [vmem:[%s1330_s3 + $0x78] sm:$0xff]  ;;  %v1258_v32 = vld [vmem:[%s1329_s2] ss:$0 sm:$0xff]  ;;  %s1059_s11 = scalar_lea.vmem %s671_s10, 128  ;;  %p1064_p1 = scmp.lt.s32.totalorder %s671_s10, %s671_s10 }
   0xe   :  { %946 = vmatprep.subr.bf16.mxu1 %v1084_v3  ;;  %v1232_v30 = vpack.c.bf16 %v39_v29, %v38_v28  ;;  %v681_v43 = vld [vmem:[%s1331_s4] ss:$0 sm:$0xff]  ;;  %s1091_s4 = smov 64   ;;  %p1060_p0 = scmp.ne.s32.totalorder %s671_s10, %s1059_s11 }
   0xf   :  { %p1065_p2 = scmp.lt.s32.totalorder %s1059_s11, %s1059_s11 }
  0x11   :  { %948 = vmatpush3.bf16.msra.mxu1 %v1181_v15  ;;  %p1066_p3 = por %p1065_p2, %p1064_p1 }
  0x12   :  { %949 = vmatprep.subr.bf16.mxu1 %v1084_v3 }
  0x13   :  { %p1067_p4 = pnand %p1066_p3, %p1060_p0 }
  0x15   :  { %951 = vmatpush3.bf16.msra.mxu1 %v1191_v18 }
  0x16   :  { %952 = vmatprep.subr.bf16.mxu1 %v1084_v3 }
  0x19   :  { %954 = vmatpush3.bf16.msra.mxu1 %v1201_v21 }
  0x1a   :  { %955 = vmatprep.subr.bf16.mxu1 %v1084_v3 }
  0x1d   :  { %957 = vmatpush3.bf16.msra.mxu1 %v1211_v24 }
  0x1e   :  { %958 = vmatprep.subr.bf16.mxu1 %v1084_v3 }
  0x21   :  { %960 = vmatpush3.bf16.msra.mxu1 %v1221_v27 }
  0x22   :  { %961 = vmatprep.subr.bf16.mxu1 %v1084_v3 }
  0x25   :  { %963 = vmatpush3.bf16.msra.mxu1 %v1232_v30 }
  0x26   :  { %992 = vmatprep.subr.bf16.mxu1 %v1084_v3 }
  0x74   :  { %v208_v31 = vpop.permute.xlu0 %207  ;;  %v514_v42 = vpop.permute.xlu1 %513 }
  0x75   :  { %815 = vmatmul.mubr.msk.f32.vlgmr.msra.gmra.mrb[0].mxu0 %vm48_vm4, %v208_v31 }
  0x76   :  { %970 = vmatpush3.bf16.msra.mxu0 %v1152_v9  ;;  %849 = vmatprep.mubr.msk.f32.mxu0 %vm1087_vm3, %v1088_v8 }
  0x77   :  { %971 = vmatprep.subr.bf16.mxu0 %v1084_v3 }
  0x78   :  { %v361_v37 = vpop.permute.xlu0 %360 }
  0x7a   :  { %973 = vmatpush3.bf16.msra.mxu0 %v1169_v12 }
  0x7b   :  { %974 = vmatprep.subr.bf16.mxu0 %v1084_v3 }
  0x7e   :  { %976 = vmatpush3.bf16.msra.mxu0 %v1181_v15 }
  0x7f   :  { %977 = vmatprep.subr.bf16.mxu0 %v1084_v3 }
  0x82   :  { %979 = vmatpush3.bf16.msra.mxu0 %v1191_v18 }
  0x83   :  { %980 = vmatprep.subr.bf16.mxu0 %v1084_v3 }
  0x86   :  { %982 = vmatpush3.bf16.msra.mxu0 %v1201_v21 }
  0x87   :  { %983 = vmatprep.subr.bf16.mxu0 %v1084_v3 }
  0x8a   :  { %985 = vmatpush3.bf16.msra.mxu0 %v1211_v24 }
  0x8b   :  { %986 = vmatprep.subr.bf16.mxu0 %v1084_v3 }
  0x8e   :  { %988 = vmatpush3.bf16.msra.mxu0 %v1221_v27 }
  0x8f   :  { %989 = vmatprep.subr.bf16.mxu0 %v1084_v3 }
  0x92   :  { %991 = vmatpush3.bf16.msra.mxu0 %v1232_v30 }
  0x93   :  { %1020 = vmatprep.subr.bf16.mxu0 %v1084_v3 }
  0xdb   :  { %v122_v33 = vpop.f32.mrb[0].mxu1 }
  0xdc   :  { %v123_v34 = vadd.f32 %v1258_v32, %v122_v33  ;;  %v774_v35 = vpop.f32.mrb[1].mxu1 }
  0xde   :  { %v126_v36 = vmax.f32 %v123_v34, 0.0 }
  0xe0   :  { %808 = vmatmul.mubr.f32.vlgmr.msra.gmra.mrb[2].mxu1 %v126_v36 }
  0xe1   :  { %995 = vmatpush3.bf16.msk.msra.mxu1 %vm1139_vm2, %v1134_v4  ;;  %856 = vmatprep.mubr.msk.f32.mxu1 %vm1087_vm3, %v1088_v8 }
  0xe2   :  { %996 = vmatprep.subr.bf16.mxu1 %v1084_v3 }
  0xe4   :  { %857 = vmatmul.mubr.msk.f32.vlgmr.msra.gmra.mrb[4].mxu1 %vm48_vm4, %v361_v37 }
  0xe5   :  { %998 = vmatpush3.bf16.msra.mxu1 %v1152_v9  ;;  %891 = vmatprep.mubr.msk.f32.mxu1 %vm1087_vm3, %v1088_v8 }
  0xe6   :  { %999 = vmatprep.subr.bf16.mxu1 %v1084_v3 }
  0xe9   :  { %1001 = vmatpush3.bf16.msra.mxu1 %v1169_v12 }
  0xea   :  { %1002 = vmatprep.subr.bf16.mxu1 %v1084_v3 }
  0xed   :  { %1004 = vmatpush3.bf16.msra.mxu1 %v1181_v15 }
  0xee   :  { %1005 = vmatprep.subr.bf16.mxu1 %v1084_v3 }
  0xf1   :  { %1007 = vmatpush3.bf16.msra.mxu1 %v1191_v18 }
  0xf2   :  { %1008 = vmatprep.subr.bf16.mxu1 %v1084_v3 }
  0xf5   :  { %1010 = vmatpush3.bf16.msra.mxu1 %v1201_v21 }
  0xf6   :  { %1011 = vmatprep.subr.bf16.mxu1 %v1084_v3 }
  0xf9   :  { %1013 = vmatpush3.bf16.msra.mxu1 %v1211_v24 }
  0xfa   :  { %1014 = vmatprep.subr.bf16.mxu1 %v1084_v3 }
  0xfd   :  { %1016 = vmatpush3.bf16.msra.mxu1 %v1221_v27 }
  0xfe   :  { %1017 = vmatprep.subr.bf16.mxu1 %v1084_v3 }
 0x101   :  { %1019 = vmatpush3.bf16.msra.mxu1 %v1232_v30 }
 0x148   :  { %v277_v38 = vpop.f32.mrb[0].mxu0 }
 0x149   :  { %v278_v39 = vadd.f32 %v1258_v32, %v277_v38  ;;  %v816_v40 = vpop.f32.mrb[1].mxu0 }
 0x14b   :  { %v281_v41 = vmax.f32 %v278_v39, 0.0 }
 0x14d   :  { %850 = vmatmul.mubr.f32.vlgmr.msra.gmra.mrb[2].mxu0 %v281_v41 }
 0x14e   :  { %1023 = vmatpush3.bf16.msk.msra.mxu0 %vm1139_vm2, %v1134_v4  ;;  %898 = vmatprep.mubr.msk.f32.mxu0 %vm1087_vm3, %v1088_v8 }
 0x14f   :  { %1024 = vmatprep.subr.bf16.mxu0 %v1084_v3 }
 0x151   :  { %899 = vmatmul.mubr.msk.f32.vlgmr.msra.gmra.mrb[4].mxu0 %vm48_vm4, %v514_v42 }
 0x152   :  { %1026 = vmatpush3.bf16.msra.mxu0 %v1152_v9  ;;  %933 = vmatprep.mubr.msk.f32.mxu0 %vm1087_vm3, %v1088_v8 }
 0x153   :  { %1027 = vmatprep.subr.bf16.mxu0 %v1084_v3 }
 0x156   :  { %1029 = vmatpush3.bf16.msra.mxu0 %v1169_v12 }
 0x157   :  { %1030 = vmatprep.subr.bf16.mxu0 %v1084_v3 }
 0x15a   :  { %1032 = vmatpush3.bf16.msra.mxu0 %v1181_v15 }
 0x15b   :  { %1033 = vmatprep.subr.bf16.mxu0 %v1084_v3 }
 0x15e   :  { %1035 = vmatpush3.bf16.msra.mxu0 %v1191_v18 }
 0x15f   :  { %1036 = vmatprep.subr.bf16.mxu0 %v1084_v3 }
 0x162   :  { %1038 = vmatpush3.bf16.msra.mxu0 %v1201_v21 }
 0x163   :  { %1039 = vmatprep.subr.bf16.mxu0 %v1084_v3 }
 0x166   :  { %1041 = vmatpush3.bf16.msra.mxu0 %v1211_v24 }
 0x167   :  { %1042 = vmatprep.subr.bf16.mxu0 %v1084_v3 }
 0x16a   :  { %1044 = vmatpush3.bf16.msra.mxu0 %v1221_v27 }
 0x16b   :  { %1045 = vmatprep.subr.bf16.mxu0 %v1084_v3 }
 0x16e   :  { %1047 = vmatpush3.bf16.msra.mxu0 %v1232_v30 }
 0x1b3   :  { %v199_v44 = vpop.f32.mrb[2].mxu1 }
 0x1b4   :  { %v200_v45 = vadd.f32 %v681_v43, %v199_v44  ;;  %v809_v46 = vpop.f32.mrb[3].mxu1 }
 0x1b6   :  { %204 = vst.msk [vmem:[#allocation2] sm:$0xff] %vm203_vm5, %v200_v45 }
 0x1b7   :  { %v430_v47 = vpop.f32.mrb[4].mxu1 }
 0x1b8   :  { %v431_v48 = vadd.f32 %v1258_v32, %v430_v47  ;;  %v858_v49 = vpop.f32.mrb[5].mxu1 }
 0x1ba   :  { %v434_v50 = vmax.f32 %v431_v48, 0.0 }
 0x1bc   :  { %892 = vmatmul.mubr.f32.vlgmr.msra.gmra.mrb[6].mxu1 %v434_v50 }
 0x220   :  { %v348_v51 = vpop.f32.mrb[2].mxu0 }
 0x221   :  { %v349_v52 = vadd.f32 %v681_v43, %v348_v51  ;;  %v851_v53 = vpop.f32.mrb[3].mxu0 }
 0x223   :  { %353 = vrot.lane.b32.xlu1 %v349_v52, %s1090_s7 }
 0x224   :  { %v583_v54 = vpop.f32.mrb[4].mxu0 }
 0x225   :  { %v584_v55 = vadd.f32 %v1258_v32, %v583_v54  ;;  %v900_v56 = vpop.f32.mrb[5].mxu0 }
 0x227   :  { %v587_v57 = vmax.f32 %v584_v55, 0.0 }
 0x229   :  { %934 = vmatmul.mubr.f32.vlgmr.msra.gmra.mrb[6].mxu0 %v587_v57 }
 0x28f   :  { %v501_v58 = vpop.f32.mrb[6].mxu1 }
 0x290   :  { %v502_v59 = vadd.f32 %v681_v43, %v501_v58  ;;  %v893_v60 = vpop.f32.mrb[7].mxu1 }
 0x292   :  { %506 = vrot.lane.b32.xlu0 %v502_v59, %s1091_s4 }
 0x295   :  { %v354_v61 = vpop.permute.xlu1 %353 }
 0x296   :  { %357 = vst.msk [vmem:[#allocation2] sm:$0xff] %vm356_vm6, %v354_v61 }
 0x2fc   :  { %v654_v62 = vpop.f32.mrb[6].mxu0 }
 0x2fd   :  { %v655_v63 = vadd.f32 %v681_v43, %v654_v62  ;;  %v935_v0 = vpop.f32.mrb[7].mxu0 }
 0x2ff   :  { %659 = vrot.lane.b32.xlu1 %v655_v63, %s1092_s8 }
 0x304   :  { %v507_v1 = vpop.permute.xlu0 %506 }
 0x305   :  { %510 = vst.msk [vmem:[#allocation2] sm:$0xff] %vm509_vm7, %v507_v1 }
 0x371   :  { %v660_v2 = vpop.permute.xlu1 %659 }
 0x372   :  { %663 = vst.msk [vmem:[#allocation2] sm:$0xff] %vm662_vm8, %v660_v2 }
 0x373   :  { %1070 = shalt.err (!%p1067_p4)
}
 0x374   :  { %s1071_s14 = scalar_lea.hbm %s1332_s5, 128 }
 0x375   :  { %p1072_p5 = scmp.ne.s32.totalorder %s1332_s5, %s1071_s14  ;;  %p1075_p6 = scmp.lt.u32.totalorder %s1071_s14, %s1332_s5 }
 0x377   :  { %p1077_p7 = pnand %p1075_p6, %p1072_p5 }
 0x379   :  { %1080 = shalt.err (!%p1077_p7)
}
 0x37a   :  { %673 = dma.vmem_to_hbm [thread:$0]  %s671_s10, 128, %s1332_s5, [#allocation3]  }
 0x37b   :  { %1081 = dma.done.wait [#allocation3], 128  }
 0x37c   :  { %1082 = vsyncadd [#allocation3], 4294967168 }
 0x37d   :  { %677 = vsyncpa [#allocation3], 1 }

</bundles_post_ra>
